<compile_context>
chip_gen: v5e
topology: v5e:2x2
jax: 0.10.0
libtpu: 0.0.40
codegen_flags: <defaults>
</compile_context>

<pallas_src>
import jax
import jax.numpy as jnp
from jax.experimental import pallas as pl
from jax.experimental.pallas import tpu as pltpu


def value_mlp_kernel(xT_ref, w1t_ref, b1_ref, w2t_ref, b2_ref, w3r_ref, b3_ref,
                     out_ref):
    wdt = w1t_ref.dtype
    xT = xT_ref[...]                                         # (S, TB)

    # Layer 1: W1ᵀ @ xᵀ + b1, ReLU.  Batch on the MXU N dim -> lane-dense.
    h1 = jnp.dot(w1t_ref[...], xT,
                 preferred_element_type=jnp.float32)         # (H, TB) f32
    h1 = jnp.maximum(h1 + b1_ref[...], 0.0)

    # Layer 2: W2ᵀ @ h1 + b2, ReLU.  Cast LHS input of the MXU back to the
    # weight dtype (no-op in the f32 path, bf16 pack in the default path);
    # accumulation stays f32.
    h2 = jnp.dot(w2t_ref[...], h1.astype(wdt),
                 preferred_element_type=jnp.float32)         # (H, TB) f32
    h2 = jnp.maximum(h2 + b2_ref[...], 0.0)

    # Head: (1,H) @ (H,TB) -> (1,TB).  Plain MXU matmul, no relayout of h2,
    # result is already the lane-dense output row (batch on lanes).
    head = jnp.dot(w3r_ref[...], h2,
                   preferred_element_type=jnp.float32)       # (1, TB)

    out_ref[...] = head + b3_ref[0]                          # b3: SMEM scalar


def value_function(state, w1, b1, w2, b2, w3, b3, *,
                   block_b=1024, compute_dtype=jnp.bfloat16):
    """Pallas forward pass of ValueFunction. Returns shape (batch,) float32.

    compute_dtype: dtype fed to the MXU for state / W1 / W2 (default bf16;
    accumulation, biases and activations stay f32).  Use jnp.float32 for an
    exact match to the fp32 PyTorch module.
    """
    B, S = state.shape
    H = w1.shape[1]
    cdt = jnp.float32 if compute_dtype is None else compute_dtype

    assert block_b % 128 == 0, "block_b must be a multiple of 128"
    # Clamp the tile to the (128-rounded) batch so tiny batches don't waste
    # MXU columns; big batches use the full block_b.  On v7x prefer block_b
    # such that cdiv(B, TB) >= 2 so both TensorCores get work.
    TB = max(128, min(block_b, ((B + 127) // 128) * 128))
    num_tiles = pl.cdiv(B, TB)            # partial last block is fine: rows
                                          # are independent, tail is discarded.

    # One-time wrapper-side layout work: batch-on-lanes (transposed) operands.
    xT = state.astype(cdt).T                          # (S, B)   streamed
    w1t = w1.T.astype(cdt)                            # (H, S)   VMEM-resident
    w2t = w2.T.astype(cdt)                            # (H, H)   VMEM-resident
    b1c = b1.reshape(H, 1).astype(jnp.float32)        # broadcast along lanes
    b2c = b2.reshape(H, 1).astype(jnp.float32)
    w3r = w3.reshape(1, H).astype(jnp.float32)        # (H,1) column -> row
    b3r = b3.reshape(1,).astype(jnp.float32)          # SMEM scalar

    const = lambda shape: pl.BlockSpec(shape, lambda i: (0, 0))

    out = pl.pallas_call(
        value_mlp_kernel,
        out_shape=jax.ShapeDtypeStruct((1, B), jnp.float32),
        grid=(num_tiles,),
        in_specs=[
            pl.BlockSpec((S, TB), lambda i: (0, i)),            # stateᵀ tile
            const((H, S)),                                      # W1ᵀ
            const((H, 1)),                                      # b1
            const((H, H)),                                      # W2ᵀ
            const((H, 1)),                                      # b2
            const((1, H)),                                      # w3 row
            pl.BlockSpec(memory_space=pltpu.MemorySpace.SMEM),  # b3 scalar
        ],
        out_specs=pl.BlockSpec((1, TB), lambda i: (0, i)),      # lane-dense
        compiler_params=pltpu.CompilerParams(
            dimension_semantics=("parallel",)),
    )(xT, w1t, b1c, w2t, b2c, w3r, b3r)

    # PyTorch's squeeze(-1): (1, B) -> (B,)
    return out[0]


def init_params(key, state_dim, hidden_dim):
    """Deterministic synthetic parameters (shapes match the nn.Linear layers,
    stored as (in_dim, out_dim) so x @ W + b == PyTorch's x @ W.T + b)."""
    k1, k2, k3, k4, k5, k6 = jax.random.split(key, 6)
    s1 = 1.0 / jnp.sqrt(state_dim)
    s2 = 1.0 / jnp.sqrt(hidden_dim)
    w1 = jax.random.uniform(k1, (state_dim, hidden_dim), jnp.float32, -s1, s1)
    b1 = jax.random.uniform(k2, (hidden_dim,), jnp.float32, -s1, s1)
    w2 = jax.random.uniform(k3, (hidden_dim, hidden_dim), jnp.float32, -s2, s2)
    b2 = jax.random.uniform(k4, (hidden_dim,), jnp.float32, -s2, s2)
    w3 = jax.random.uniform(k5, (hidden_dim, 1), jnp.float32, -s2, s2)
    b3 = jax.random.uniform(k6, (1,), jnp.float32, -s2, s2)
    return w1, b1, w2, b2, w3, b3


def value_function_ref(state, w1, b1, w2, b2, w3, b3):
    h1 = jnp.maximum(state @ w1 + b1, 0.0)
    h2 = jnp.maximum(h1 @ w2 + b2, 0.0)
    return (h2 @ w3 + b3)[:, 0]


if __name__ == "__main__":
    batch = 300          # not a multiple of 128 -> exercises the partial block
    state_dim = 16
    hidden_dim = 32

    key = jax.random.PRNGKey(0)
    k_state, k_params = jax.random.split(key)
    state = jax.random.normal(k_state, (batch, state_dim), jnp.float32)
    params = init_params(k_params, state_dim, hidden_dim)

    ref = value_function_ref(state, *params)

    # Exact-f32 path (matches the PyTorch fp32 module), single grid step.
    out_f32 = jax.block_until_ready(
        value_function(state, *params, compute_dtype=jnp.float32))
    assert out_f32.shape == (batch,), out_f32.shape
    assert jnp.allclose(out_f32, ref, atol=1e-4, rtol=1e-4)

    # Default bf16 MXU-input path (f32 accumulate / bias / ReLU).
    out_bf16 = jax.block_until_ready(value_function(state, *params))
    assert out_bf16.shape == (batch,), out_bf16.shape
    assert jnp.allclose(out_bf16, ref, atol=5e-2, rtol=5e-2)

    # Multi-step grid (weight residency + partial last block across steps).
    out_multi = jax.block_until_ready(
        value_function(state, *params, block_b=128, compute_dtype=jnp.float32))
    assert jnp.allclose(out_multi, ref, atol=1e-4, rtol=1e-4)

    print("KERNEL_OK")
</pallas_src>

<mosaic_0001>
module attributes {stable_mosaic.version = 11 : i64} {
  func.func @value_mlp_kernel(%arg0: i32, %arg1: memref<16x384xf32, #tpu.memory_space<vmem>>, %arg2: memref<32x16xf32, #tpu.memory_space<vmem>>, %arg3: memref<32x1xf32, #tpu.memory_space<vmem>>, %arg4: memref<32x32xf32, #tpu.memory_space<vmem>>, %arg5: memref<32x1xf32, #tpu.memory_space<vmem>>, %arg6: memref<1x32xf32, #tpu.memory_space<vmem>>, %arg7: memref<1xf32, #tpu.memory_space<smem>>, %arg8: memref<1x384xf32, #tpu.memory_space<vmem>>) attributes {dimension_semantics = [#tpu.dimension_semantics<parallel>], iteration_bounds = array<i64: 1>, scalar_prefetch = 0 : i64, scratch_operands = 0 : i64, tpu.core_type = #tpu.core_type<tc>, window_params = [{transform_indices = @transform_0, window_bounds = array<i64: 16, 384>}, {pipeline_mode = #tpu.pipeline_mode<synchronous>, transform_indices = @transform_1, window_bounds = array<i64: 32, 16>}, {pipeline_mode = #tpu.pipeline_mode<synchronous>, transform_indices = @transform_2, window_bounds = array<i64: 32, 1>}, {pipeline_mode = #tpu.pipeline_mode<synchronous>, transform_indices = @transform_3, window_bounds = array<i64: 32, 32>}, {pipeline_mode = #tpu.pipeline_mode<synchronous>, transform_indices = @transform_4, window_bounds = array<i64: 32, 1>}, {pipeline_mode = #tpu.pipeline_mode<synchronous>, transform_indices = @transform_5, window_bounds = array<i64: 1, 32>}, {transform_indices = @transform_6, window_bounds = array<i64: 1>}, {transform_indices = @transform_7, window_bounds = array<i64: 1, 384>}]} {
    %c0 = arith.constant 0 : index
    %c0_0 = arith.constant 0 : index
    %0 = vector.load %arg1[%c0, %c0_0] : memref<16x384xf32, #tpu.memory_space<vmem>>, vector<16x384xf32>
    %c0_1 = arith.constant 0 : index
    %c0_2 = arith.constant 0 : index
    %1 = vector.load %arg2[%c0_1, %c0_2] : memref<32x16xf32, #tpu.memory_space<vmem>>, vector<32x16xf32>
    %cst = arith.constant dense<0.000000e+00> : vector<32x384xf32>
    %2 = tpu.matmul %1, %0, %cst {dimension_numbers = #tpu.dot_dimension_numbers<[1], [0], [0], [1], [0, 0, 1, 1], [], []>} : vector<32x16xf32>, vector<16x384xf32>, vector<32x384xf32> -> vector<32x384xf32>
    %c0_3 = arith.constant 0 : index
    %c0_4 = arith.constant 0 : index
    %3 = vector.load %arg3[%c0_3, %c0_4] : memref<32x1xf32, #tpu.memory_space<vmem>>, vector<32x1xf32>
    %4 = vector.broadcast %3 : vector<32x1xf32> to vector<32x384xf32>
    %5 = arith.addf %2, %4 : vector<32x384xf32>
    %cst_5 = arith.constant 0.000000e+00 : f32
    %6 = vector.broadcast %cst_5 : f32 to vector<32x384xf32>
    %7 = arith.maximumf %5, %6 : vector<32x384xf32>
    %c0_6 = arith.constant 0 : index
    %c0_7 = arith.constant 0 : index
    %8 = vector.load %arg4[%c0_6, %c0_7] : memref<32x32xf32, #tpu.memory_space<vmem>>, vector<32x32xf32>
    %cst_8 = arith.constant dense<0.000000e+00> : vector<32x384xf32>
    %9 = tpu.matmul %8, %7, %cst_8 {dimension_numbers = #tpu.dot_dimension_numbers<[1], [0], [0], [1], [0, 0, 1, 1], [], []>} : vector<32x32xf32>, vector<32x384xf32>, vector<32x384xf32> -> vector<32x384xf32>
    %c0_9 = arith.constant 0 : index
    %c0_10 = arith.constant 0 : index
    %10 = vector.load %arg5[%c0_9, %c0_10] : memref<32x1xf32, #tpu.memory_space<vmem>>, vector<32x1xf32>
    %11 = vector.broadcast %10 : vector<32x1xf32> to vector<32x384xf32>
    %12 = arith.addf %9, %11 : vector<32x384xf32>
    %cst_11 = arith.constant 0.000000e+00 : f32
    %13 = vector.broadcast %cst_11 : f32 to vector<32x384xf32>
    %14 = arith.maximumf %12, %13 : vector<32x384xf32>
    %c0_12 = arith.constant 0 : index
    %c0_13 = arith.constant 0 : index
    %15 = vector.load %arg6[%c0_12, %c0_13] : memref<1x32xf32, #tpu.memory_space<vmem>>, vector<1x32xf32>
    %cst_14 = arith.constant dense<0.000000e+00> : vector<1x384xf32>
    %16 = tpu.matmul %15, %14, %cst_14 {dimension_numbers = #tpu.dot_dimension_numbers<[1], [0], [0], [1], [0, 0, 1, 1], [], []>} : vector<1x32xf32>, vector<32x384xf32>, vector<1x384xf32> -> vector<1x384xf32>
    %c0_15 = arith.constant 0 : index
    %17 = memref.load %arg7[%c0_15] : memref<1xf32, #tpu.memory_space<smem>>
    %18 = vector.broadcast %17 : f32 to vector<1x384xf32>
    %19 = arith.addf %16, %18 : vector<1x384xf32>
    %c0_16 = arith.constant 0 : index
    %c0_17 = arith.constant 0 : index
    %20 = vector.load %arg8[%c0_16, %c0_17] : memref<1x384xf32, #tpu.memory_space<vmem>>, vector<1x384xf32>
    tpu.vector_store %arg8[%c0_16, %c0_17], %19 {strides = array<i32>} : memref<1x384xf32, #tpu.memory_space<vmem>>, vector<1x384xf32>,
    return
  }
  func.func @transform_0(%arg0: i32) -> (i32, i32) {
    %c0_i32 = arith.constant 0 : i32
    %c0_i32_0 = arith.constant 0 : i32
    return %c0_i32, %arg0 : i32, i32
  }
  func.func @transform_1(%arg0: i32) -> (i32, i32) {
    %c0_i32 = arith.constant 0 : i32
    %c0_i32_0 = arith.constant 0 : i32
    %c0_i32_1 = arith.constant 0 : i32
    return %c0_i32, %c0_i32_0 : i32, i32
  }
  func.func @transform_2(%arg0: i32) -> (i32, i32) {
    %c0_i32 = arith.constant 0 : i32
    %c0_i32_0 = arith.constant 0 : i32
    %c0_i32_1 = arith.constant 0 : i32
    return %c0_i32, %c0_i32_0 : i32, i32
  }
  func.func @transform_3(%arg0: i32) -> (i32, i32) {
    %c0_i32 = arith.constant 0 : i32
    %c0_i32_0 = arith.constant 0 : i32
    %c0_i32_1 = arith.constant 0 : i32
    return %c0_i32, %c0_i32_0 : i32, i32
  }
  func.func @transform_4(%arg0: i32) -> (i32, i32) {
    %c0_i32 = arith.constant 0 : i32
    %c0_i32_0 = arith.constant 0 : i32
    %c0_i32_1 = arith.constant 0 : i32
    return %c0_i32, %c0_i32_0 : i32, i32
  }
  func.func @transform_5(%arg0: i32) -> (i32, i32) {
    %c0_i32 = arith.constant 0 : i32
    %c0_i32_0 = arith.constant 0 : i32
    %c0_i32_1 = arith.constant 0 : i32
    return %c0_i32, %c0_i32_0 : i32, i32
  }
  func.func @transform_6(%arg0: i32) -> i32 {
    %c0_i32 = arith.constant 0 : i32
    %c0_i32_0 = arith.constant 0 : i32
    return %c0_i32 : i32
  }
  func.func @transform_7(%arg0: i32) -> (i32, i32) {
    %c0_i32 = arith.constant 0 : i32
    %c0_i32_0 = arith.constant 0 : i32
    return %c0_i32, %arg0 : i32, i32
  }
}

</mosaic_0001>

<bundles_post_ra>
// kernel: tpu_custom_call.1
= control target key start
LH: loop header
LB: loop body
LE: loop exit
PB: predicated region body
PF: predicated region fallthrough
CT: control target
= control target key end

     0   :  { %vm62_vm0 = vcmask 130048   ;;  %s617_s0 = inlined_call_operand.vmem [shape: f32[16,300], index: 0, kind: input, shape index: {}]   ;;  %s618_s1 = inlined_call_operand.vmem [shape: f32[32,16], index: 1, kind: input, shape index: {}]   ;;  %s619_s2 = inlined_call_operand.vmem [shape: f32[32,1], index: 2, kind: input, shape index: {}]   ;;  %s620_s3 = inlined_call_operand.vmem [shape: f32[32,32], index: 3, kind: input, shape index: {}]   ;;  %s621_s4 = inlined_call_operand.vmem [shape: f32[32,1], index: 4, kind: input, shape index: {}]   ;;  %s622_s5 = inlined_call_operand.vmem [shape: f32[1,32], index: 5, kind: input, shape index: {}]   ;;  %s623_s6 = inlined_call_operand.<no memory space> [shape: f32[1], index: 6, kind: input, shape index: {}]   ;;  %s624_s7 = inlined_call_operand.hbm [shape: f32[1,300], index: 7, kind: output, shape index: {}]  }
   0x1   :  { %v31_v0 = vld [vmem:[%s617_s0 + $0x18] sm:$0xff]  ;;  %v32_v1 = vld [vmem:[%s617_s0 + $0x20] sm:$0xff]  ;;  %v29_v3 = vld [vmem:[%s617_s0 + $0x8] sm:$0xff] }
   0x2   :  { %v28_v2 = vld [vmem:[%s617_s0] sm:$0xff]  ;;  %89 = vmatpush.msra.mxu0 %v31_v0  ;;  %118 = vmatpush.msra.mxu1 %v32_v1  ;;  %v37_v5 = vld [vmem:[%s618_s1 + $0x18] sm:$0xff]  ;;  %v39_v7 = vld [vmem:[%s619_s2 + $0x8] sm:$0xff] }
   0x3   :  { %v34_v4 = vld [vmem:[%s618_s1] sm:$0xff]  ;;  %440 = vmatpush.msra.mxu2 %v32_v1  ;;  %438 = vmatpush.msra.mxu3 %v31_v0  ;;  %v41_v6 = vld [vmem:[%s619_s2 + $0x18] sm:$0xff] }
   0x4   :  { %90 = vmatpush.msra.mxu0 %v28_v2  ;;  %119 = vmatpush.msra.mxu1 %v29_v3 }
   0x5   :  { %441 = vmatpush.msra.mxu2 %v29_v3  ;;  %411 = vmatmul.msk.f32.vlgmr.msra.gmra.mxu0 %vm62_vm0, %v34_v4 }
   0x6   :  { %415 = vmatmul.msk.f32.vlgmr.msra.gmra.mxu1 %vm62_vm0, %v34_v4  ;;  %418 = vmatmul.msk.f32.vlgmr.msra.gmra.mxu2 %vm62_vm0, %v37_v5 }
   0x7   :  { %13 = vsyncpa [#allocation4], 0  ;;  %439 = vmatpush.msra.mxu3 %v28_v2  ;;  %v473_v8 = vmov 0   ;;  %v33_v9 = vld [vmem:[%s617_s0 + $0x28] sm:$0xff]  ;;  %v30_v10 = vld [vmem:[%s617_s0 + $0x10] sm:$0xff]  ;;  %vm202_vm1 = vcmask 261120  }
   0x8   :  { %445 = vset.pattern.permute.xlu1 %v473_v8  ;;  %444 = vset.pattern.permute.xlu0 %v473_v8  ;;  %v35_v11 = vld [vmem:[%s618_s1 + $0x8] sm:$0xff]  ;;  %v40_v12 = vld [vmem:[%s619_s2 + $0x10] sm:$0xff]  ;;  %v38_v13 = vld [vmem:[%s619_s2] sm:$0xff]  ;;  %vm385_vm2 = vcmask 1040384   ;;  %s474_s20 = smov [#allocation3]   ;;  %s402_s24 = sshll.u32 %s624_s7, 4  ;;  %s403_s24 = int_to_ptr.hbm [resolvable:$true] %s402_s24 }
   0x9   :  { %414 = vmatmul.msk.f32.vlgmr.msra.gmra.mxu3 %vm62_vm0, %v37_v5  ;;  %59 = vperm.xlu0 %444, %v41_v6   ;;  %v36_v14 = vld [vmem:[%s618_s1 + $0x10] sm:$0xff]  ;;  %v179_v15 = vld [vmem:[%s621_s4 + $0x8] sm:$0xff]  ;;  %v178_v16 = vld [vmem:[%s621_s4] sm:$0xff]  ;;  %s400_s21 = sshll.u32 %s474_s20, 4  ;;  %vm387_vm3 = vcmask 1041408   ;;  %s401_s21 = int_to_ptr.vmem [resolvable:$true] %s400_s21 }
   0xa   :  { %49 = vperm.xlu1 %445, %v39_v7   ;;  %147 = vmatpush.msrb.mxu2 %v33_v9  ;;  %v174_v47 = vld [vmem:[%s620_s3] sm:$0xff]  ;;  %v175_v49 = vld [vmem:[%s620_s3 + $0x8] sm:$0xff]  ;;  %v176_v51 = vld [vmem:[%s620_s3 + $0x10] sm:$0xff] }
   0xb   :  { %446 = vset.pattern.permute.xlu2 %v473_v8  ;;  %v181_v56 = vld [vmem:[%s621_s4 + $0x18] sm:$0xff]  ;;  %v180_v62 = vld [vmem:[%s621_s4 + $0x10] sm:$0xff] }
   0xc   :  { %148 = vmatpush.msrb.mxu2 %v30_v10  ;;  %199 = vperm.xlu2 %446, %v181_v56   ;;  %v177_v60 = vld [vmem:[%s620_s3 + $0x18] sm:$0xff] }
   0xd   :  { %412 = vmatmul.msk.f32.gmra.mxu0 %vm62_vm0, %v35_v11 }
   0xe   :  { %416 = vmatmul.msk.f32.gmra.mxu1 %vm62_vm0, %v35_v11  ;;  %419 = vmatmul.msk.f32.vlgmr.msrb.gmra.mxu2 %vm62_vm0, %v34_v4 }
  0x11   :  { %54 = vperm.xlu0 %444, %v40_v12  }
  0x12   :  { %44 = vperm.xlu1 %445, %v38_v13  }
  0x14   :  { %194 = vperm.xlu2 %446, %v180_v62  }
  0x15   :  { %413 = vmatmul.msk.f32.gmra.mxu0 %vm62_vm0, %v36_v14 }
  0x16   :  { %417 = vmatmul.msk.f32.gmra.mxu1 %vm62_vm0, %v36_v14  ;;  %420 = vmatmul.msk.f32.gmra.mxu2 %vm62_vm0, %v35_v11 }
  0x19   :  { %189 = vperm.xlu0 %444, %v179_v15  }
  0x1a   :  { %184 = vperm.xlu1 %445, %v178_v16  }
  0x1e   :  { %421 = vmatmul.msk.f32.gmra.mxu2 %vm62_vm0, %v36_v14 }
  0x26   :  { %422 = vmatmul.msk.f32.gmra.mxu2 %vm62_vm0, %v37_v5 }
  0x66   :  { %v200_v2 = vpop.permute.xlu2 %199 }
  0x6e   :  { %v195_v5 = vpop.permute.xlu2 %194 }
  0x7b   :  { %v60_v19 = vpop.permute.xlu0 %59 }
  0x7c   :  { %v50_v20 = vpop.permute.xlu1 %49 }
  0x82   :  { %v92_v17 = vpop.f32.mrf.mxu0 }
  0x83   :  { %v121_v18 = vpop.f32.mrf.mxu1  ;;  %v55_v29 = vpop.permute.xlu0 %54 }
  0x84   :  { %v45_v32 = vpop.permute.xlu1 %44 }
  0x85   :  { %v122_v38 = vadd.f32 %v121_v18, %v45_v32  ;;  %v93_v41 = vadd.f32 %v92_v17, %v45_v32 }
  0x87   :  { %v163_v44 = vmax.f32 %v122_v38, 0.0  ;;  %v162_v46 = vmax.f32 %v93_v41, 0.0  ;;  %v316_v41 = vstv %s623_s6 }
  0x89   :  { %v130_v21 = vpop.f32.mrf.mxu2 }
  0x8a   :  { %v131_v22 = vadd.f32 %v130_v21, %v60_v19  ;;  %v95_v23 = vpop.f32.mrf.mxu0 }
  0x8b   :  { %v124_v24 = vpop.f32.mrf.mxu1  ;;  %v96_v30 = vadd.f32 %v95_v23, %v50_v20  ;;  %v190_v11 = vpop.permute.xlu0 %189 }
  0x8c   :  { %v172_v25 = vmax.f32 %v131_v22, 0.0  ;;  %v101_v26 = vpop.f32.mrf.mxu3  ;;  %v125_v33 = vadd.f32 %v124_v24, %v50_v20  ;;  %v185_v15 = vpop.permute.xlu1 %184 }
  0x8d   :  { %v102_v27 = vadd.f32 %v101_v26, %v60_v19  ;;  %v165_v39 = vmax.f32 %v96_v30, 0.0  ;;  %v314_v26 = vld [vmem:[%s622_s5] sm:$0x1] }
  0x8e   :  { %256 = vmatpush.msrb.mxu0 %v172_v25  ;;  %v166_v42 = vmax.f32 %v125_v33, 0.0 }
  0x8f   :  { %v171_v28 = vmax.f32 %v102_v27, 0.0 }
  0x91   :  { %v150_v31 = vpop.f32.mrf.mxu2  ;;  %227 = vmatpush.msrb.mxu3 %v171_v28 }
  0x92   :  { %v98_v34 = vpop.f32.mrf.mxu0  ;;  %v151_v57 = vadd.f32 %v150_v31, %v45_v32 }
  0x93   :  { %v99_v35 = vadd.f32 %v98_v34, %v55_v29  ;;  %v127_v36 = vpop.f32.mrf.mxu1 }
  0x94   :  { %v128_v37 = vadd.f32 %v127_v36, %v55_v29  ;;  %v164_v61 = vmax.f32 %v151_v57, 0.0 }
  0x95   :  { %v168_v40 = vmax.f32 %v99_v35, 0.0 }
  0x96   :  { %v169_v43 = vmax.f32 %v128_v37, 0.0 }
  0x97   :  { %228 = vmatpush.msrb.mxu3 %v168_v40 }
  0x98   :  { %257 = vmatpush.msrb.mxu0 %v169_v43 }
  0x99   :  { %v153_v45 = vpop.f32.mrf.mxu2  ;;  %229 = vmatpush.msrb.mxu3 %v165_v39 }
  0x9a   :  { %258 = vmatpush.msrb.mxu0 %v166_v42  ;;  %v154_v54 = vadd.f32 %v153_v45, %v50_v20 }
  0x9b   :  { %230 = vmatpush.msrb.mxu3 %v162_v46 }
  0x9c   :  { %259 = vmatpush.msrb.mxu0 %v163_v44  ;;  %423 = vmatmul.msk.f32.vlgmr.msrb.gmra.mxu3 %vm202_vm1, %v174_v47  ;;  %v167_v59 = vmax.f32 %v154_v54, 0.0  ;;  %v390_v44 = vlaneseq }
  0x9d   :  { %427 = vmatmul.msk.f32.vlgmr.msrb.gmra.mxu0 %vm202_vm1, %v174_v47 }
  0x9e   :  { %vm392_vm4 = vcmp.lt.s32.totalorder %v390_v44, 384 }
  0xa1   :  { %v156_v48 = vpop.f32.mrf.mxu2 }
  0xa2   :  { %v157_v52 = vadd.f32 %v156_v48, %v55_v29 }
  0xa4   :  { %424 = vmatmul.msk.f32.gmra.mxu3 %vm202_vm1, %v175_v49  ;;  %v170_v58 = vmax.f32 %v157_v52, 0.0 }
  0xa5   :  { %428 = vmatmul.msk.f32.gmra.mxu0 %vm202_vm1, %v175_v49 }
  0xa9   :  { %v159_v50 = vpop.f32.mrf.mxu2 }
  0xaa   :  { %v160_v53 = vadd.f32 %v159_v50, %v60_v19 }
  0xac   :  { %v173_v55 = vmax.f32 %v160_v53, 0.0  ;;  %425 = vmatmul.msk.f32.gmra.mxu3 %vm202_vm1, %v176_v51 }
  0xad   :  { %429 = vmatmul.msk.f32.gmra.mxu0 %vm202_vm1, %v176_v51 }
  0xae   :  { %285 = vmatpush.msrb.mxu1 %v173_v55 }
  0xb0   :  { %286 = vmatpush.msrb.mxu1 %v170_v58 }
  0xb2   :  { %287 = vmatpush.msrb.mxu1 %v167_v59 }
  0xb4   :  { %288 = vmatpush.msrb.mxu1 %v164_v61  ;;  %426 = vmatmul.msk.f32.gmra.mxu3 %vm202_vm1, %v177_v60 }
  0xb5   :  { %430 = vmatmul.msk.f32.gmra.mxu0 %vm202_vm1, %v177_v60  ;;  %431 = vmatmul.msk.f32.vlgmr.msrb.gmra.mxu1 %vm202_vm1, %v174_v47 }
  0xbd   :  { %432 = vmatmul.msk.f32.gmra.mxu1 %vm202_vm1, %v175_v49 }
  0xc5   :  { %433 = vmatmul.msk.f32.gmra.mxu1 %vm202_vm1, %v176_v51 }
  0xcd   :  { %434 = vmatmul.msk.f32.gmra.mxu1 %vm202_vm1, %v177_v60 }
 0x11a   :  { %v261_v63 = vpop.f32.mrf.mxu0 }
 0x11b   :  { %v262_v17 = vadd.f32 %v261_v63, %v185_v15 }
 0x11d   :  { %v303_v25 = vmax.f32 %v262_v17, 0.0 }
 0x11f   :  { %v232_v0 = vpop.f32.mrf.mxu3 }
 0x120   :  { %v233_v27 = vadd.f32 %v232_v0, %v185_v15 }
 0x122   :  { %v264_v1 = vpop.f32.mrf.mxu0  ;;  %v302_v29 = vmax.f32 %v233_v27, 0.0 }
 0x123   :  { %v265_v12 = vadd.f32 %v264_v1, %v190_v11 }
 0x125   :  { %v306_v20 = vmax.f32 %v265_v12, 0.0 }
 0x127   :  { %v235_v3 = vpop.f32.mrf.mxu3 }
 0x128   :  { %v236_v21 = vadd.f32 %v235_v3, %v190_v11 }
 0x12a   :  { %v267_v4 = vpop.f32.mrf.mxu0  ;;  %v305_v28 = vmax.f32 %v236_v21, 0.0 }
 0x12b   :  { %v268_v7 = vadd.f32 %v267_v4, %v195_v5 }
 0x12d   :  { %v309_v13 = vmax.f32 %v268_v7, 0.0 }
 0x12f   :  { %v238_v6 = vpop.f32.mrf.mxu3 }
 0x130   :  { %v239_v16 = vadd.f32 %v238_v6, %v195_v5 }
 0x132   :  { %v270_v8 = vpop.f32.mrf.mxu0  ;;  %v290_v9 = vpop.f32.mrf.mxu1  ;;  %v308_v22 = vmax.f32 %v239_v16, 0.0 }
 0x133   :  { %v271_v10 = vadd.f32 %v270_v8, %v200_v2  ;;  %v291_v36 = vadd.f32 %v290_v9, %v185_v15 }
 0x135   :  { %v312_v14 = vmax.f32 %v271_v10, 0.0  ;;  %v304_v39 = vmax.f32 %v291_v36, 0.0 }
 0x137   :  { %352 = vmatpush.msra.mxu3 %v312_v14  ;;  %v241_v18 = vpop.f32.mrf.mxu3 }
 0x138   :  { %v242_v19 = vadd.f32 %v241_v18, %v200_v2 }
 0x139   :  { %353 = vmatpush.msra.mxu3 %v309_v13 }
 0x13a   :  { %v311_v23 = vmax.f32 %v242_v19, 0.0  ;;  %v293_v24 = vpop.f32.mrf.mxu1 }
 0x13b   :  { %354 = vmatpush.msra.mxu3 %v306_v20  ;;  %v294_v34 = vadd.f32 %v293_v24, %v190_v11 }
 0x13c   :  { %332 = vmatpush.msra.mxu2 %v311_v23 }
 0x13d   :  { %355 = vmatpush.msra.mxu3 %v303_v25  ;;  %v307_v38 = vmax.f32 %v294_v34, 0.0 }
 0x13e   :  { %333 = vmatpush.msra.mxu2 %v308_v22  ;;  %436 = vmatmul.msk.f32.vlgmr.msra.gmra.mxu3 %vm202_vm1, %v314_v26 }
 0x140   :  { %334 = vmatpush.msra.mxu2 %v305_v28 }
 0x142   :  { %v296_v30 = vpop.f32.mrf.mxu1  ;;  %335 = vmatpush.msra.mxu2 %v302_v29 }
 0x143   :  { %435 = vmatmul.msk.f32.vlgmr.msra.gmra.mxu2 %vm202_vm1, %v314_v26  ;;  %v297_v32 = vadd.f32 %v296_v30, %v195_v5 }
 0x145   :  { %v310_v37 = vmax.f32 %v297_v32, 0.0 }
 0x14a   :  { %v299_v31 = vpop.f32.mrf.mxu1 }
 0x14b   :  { %v300_v33 = vadd.f32 %v299_v31, %v200_v2 }
 0x14d   :  { %v313_v35 = vmax.f32 %v300_v33, 0.0 }
 0x14f   :  { %372 = vmatpush.msrb.mxu2 %v313_v35 }
 0x151   :  { %373 = vmatpush.msrb.mxu2 %v310_v37 }
 0x153   :  { %374 = vmatpush.msrb.mxu2 %v307_v38 }
 0x155   :  { %375 = vmatpush.msrb.mxu2 %v304_v39 }
 0x156   :  { %437 = vmatmul.msk.f32.vlgmr.msrb.gmra.mxu2 %vm202_vm1, %v314_v26 }
 0x1c1   :  { %v357_v42 = vpop.f32.mrf.mxu3 }
 0x1c2   :  { %v358_v43 = vadd.f32 %v357_v42, %v316_v41 }
 0x1c4   :  { %v383_v46 = vrot.slane %v358_v43, 7 }
 0x1c6   :  { %v337_v40 = vpop.f32.mrf.mxu2 }
 0x1c7   :  { %v338_v45 = vadd.f32 %v337_v40, %v316_v41 }
 0x1c9   :  { %v386_v50 = vsel %vm385_vm2, %v338_v45, %v383_v46 }
 0x1d9   :  { %v377_v47 = vpop.f32.mrf.mxu2 }
 0x1da   :  { %v378_v48 = vadd.f32 %v377_v47, %v316_v41 }
 0x1dc   :  { %v384_v49 = vrot.slane %v378_v48, 6 }
 0x1de   :  { %v388_v51 = vsel %vm387_vm3, %v386_v50, %v384_v49 }
 0x1df   :  { %394 = vst.msk [vmem:[#allocation3] sm:$0x7] %vm392_vm4, %v388_v51 }
 0x1e0   :  { %405 = dma.vmem_to_hbm [thread:$0]  %s401_s21, 48, %s403_s24, [#allocation4]  }
 0x1e1   :  { %471 = dma.done.wait [#allocation4], 48  }
 0x1e2   :  { %472 = vsyncadd [#allocation4], 4294967248 }
 0x1e3   :  { %410 = vsyncpa [#allocation4], 1 }

</bundles_post_ra>
